<compile_context>
chip_gen: v6e
topology: v6e:2x2x1
jax: 0.10.0
libtpu: 0.0.40
codegen_flags: <defaults>
</compile_context>

<pallas_src>
import jax
import jax.numpy as jnp
from jax import lax
from jax.experimental import pallas as pl
from jax.experimental.pallas import tpu as pltpu

HIDDEN = 256


def _critic1_kernel(state_ref, action_ref,
                    w1s_ref, w1a_ref, bh1_ref,
                    w2_ref, bh2_ref,
                    wout_ref, bout_ref,
                    q_ref):
    """One batch tile of the fused twin-head MLP.

    Layer widths are doubled (2*HIDDEN = 512) so both Q heads share each matmul:
      layer 1: h = relu(state @ W1s + action @ W1a + [b1|b4])        (tb, 512)
      layer 2: h = relu(h @ blockdiag(W2, W5) + [b2|b5])             (tb, 512)
      layer 3: q = h @ [[W3, 0], [0, W6]] + [b3, b6]                 (tb, 2)
    Column 0 of q is q1, column 1 is q2.
    """
    cdt = w2_ref.dtype  # matmul input dtype (f32, or bf16 on v6e/v7x)

    h = jnp.dot(state_ref[...], w1s_ref[...], preferred_element_type=jnp.float32)
    h = h + jnp.dot(action_ref[...], w1a_ref[...], preferred_element_type=jnp.float32)
    h = jnp.maximum(h + bh1_ref[...], 0.0)

    h = jnp.dot(h.astype(cdt), w2_ref[...], preferred_element_type=jnp.float32)
    h = jnp.maximum(h + bh2_ref[...], 0.0)

    q = jnp.dot(h.astype(cdt), wout_ref[...], preferred_element_type=jnp.float32)

    # Per-column scalar biases (b3, b6) live in SMEM; add via a lane-index select.
    col = lax.broadcasted_iota(jnp.int32, q.shape, 1)
    q = q + jnp.where(col == 0, bout_ref[0], bout_ref[1])

    q_ref[...] = q.astype(q_ref.dtype)


def pack_critic1_params(params, state_dim, *, dtype=jnp.float32):
    """Fuse the six nn.Linear layers of the twin heads into three fused weights.

    params : (w1,b1,w2,b2,w3,b3,w4,b4,w5,b5,w6,b6), weights as (in, out).
    dtype  : matmul-input dtype for weights/activations (use jnp.bfloat16 on
             v6e/v7x to halve weight DMA bytes; accumulation stays f32).
    Returns (w1s, w1a, bh1, w2blk, bh2, wout, bout).
    """
    (w1, b1, w2, b2, w3, b3, w4, b4, w5, b5, w6, b6) = params
    h = w1.shape[1]

    # Layer 1: [W1 | W4] -> (in_dim, 2h), split by rows into state/action parts
    # so the kernel never needs a concatenated "sa" input.
    w_l1 = jnp.concatenate([w1, w4], axis=1)
    w1s = w_l1[:state_dim].astype(dtype)          # (state_dim, 2h)
    w1a = w_l1[state_dim:].astype(dtype)          # (action_dim, 2h)
    bh1 = jnp.concatenate([b1, b4], axis=1).astype(jnp.float32)   # (1, 2h)

    # Layer 2: exact-zero off-diagonal blocks keep the two heads independent.
    zero = jnp.zeros((h, h), w2.dtype)
    w2blk = jnp.block([[w2, zero], [zero, w5]]).astype(dtype)     # (2h, 2h)
    bh2 = jnp.concatenate([b2, b5], axis=1).astype(jnp.float32)   # (1, 2h)

    # Layer 3: stacked output weight -> (2h, 2); column 0 = q1, column 1 = q2.
    wout = jnp.concatenate(
        [jnp.concatenate([w3, jnp.zeros_like(w3)], axis=1),
         jnp.concatenate([jnp.zeros_like(w6), w6], axis=1)],
        axis=0).astype(dtype)                                     # (2h, 2)
    bout = jnp.concatenate([b3.reshape(-1), b6.reshape(-1)]).astype(jnp.float32)  # (2,)

    return (w1s, w1a, bh1, w2blk, bh2, wout, bout)


def critic1_forward(state, action, packed_params, *, block_b=512):
    """Returns (q1, q2), each (B, 1) float32."""
    (w1s, w1a, bh1, w2blk, bh2, wout, bout) = packed_params
    B = state.shape[0]
    state_dim = state.shape[1]
    action_dim = action.shape[1]
    two_h = w2blk.shape[1]
    cdt = w2blk.dtype

    state = state.astype(cdt)
    action = action.astype(cdt)

    # Batch tiling: single full-batch tile for small B, otherwise fixed
    # sublane-aligned tiles with zero-padding (padded rows are discarded).
    if B <= block_b:
        tb, nb, b_pad = B, 1, B
    else:
        tb = block_b                      # multiple of 8 (sublane aligned)
        nb = (B + tb - 1) // tb
        b_pad = nb * tb
    if b_pad != B:
        pad = b_pad - B
        state = jnp.pad(state, ((0, pad), (0, 0)))
        action = jnp.pad(action, ((0, pad), (0, 0)))

    itemsize = jnp.dtype(cdt).itemsize
    flops = 2 * b_pad * (state_dim * two_h + action_dim * two_h
                         + two_h * two_h + two_h * 2)
    bytes_accessed = ((w1s.size + w1a.size + w2blk.size + wout.size) * itemsize
                      + (bh1.size + bh2.size + bout.size) * 4
                      + (state.size + action.size) * itemsize
                      + b_pad * 2 * 4)

    def tiled(shape):      # activation / output tiles: walk the batch axis
        return pl.BlockSpec(shape, lambda i: (i, 0))

    def whole(shape):      # weights / biases: resident, same block every step
        return pl.BlockSpec(shape, lambda i: (0, 0))

    # NOTE: default scoped-VMEM limit is ample here (weights ~1 MiB + a few
    # activation tiles), even on v7x's 64 MiB parts, so no vmem_limit_bytes.
    q = pl.pallas_call(
        _critic1_kernel,
        out_shape=jax.ShapeDtypeStruct((b_pad, 2), jnp.float32),
        grid=(nb,),
        in_specs=[
            tiled((tb, state_dim)),
            tiled((tb, action_dim)),
            whole((state_dim, two_h)),
            whole((action_dim, two_h)),
            whole((1, two_h)),
            whole((two_h, two_h)),
            whole((1, two_h)),
            whole((two_h, 2)),
            pl.BlockSpec(memory_space=pltpu.MemorySpace.SMEM),   # (b3, b6) scalars
        ],
        out_specs=tiled((tb, 2)),
        compiler_params=pltpu.CompilerParams(
            dimension_semantics=("parallel",)),
        cost_estimate=pl.CostEstimate(
            flops=flops, transcendentals=0, bytes_accessed=bytes_accessed),
    )(state, action, w1s, w1a, bh1, w2blk, bh2, wout, bout)

    q1 = q[:B, 0:1]
    q2 = q[:B, 1:2]
    return q1, q2


def init_critic1_params(key, state_dim, action_dim, hidden=HIDDEN):
    """Deterministic PyTorch-style (uniform +-1/sqrt(fan_in)) init."""
    in_dim = state_dim + action_dim

    def linear(key, fan_in, fan_out):
        kw, kb = jax.random.split(key)
        bound = 1.0 / jnp.sqrt(jnp.float32(fan_in))
        w = jax.random.uniform(kw, (fan_in, fan_out), jnp.float32, -bound, bound)
        b = jax.random.uniform(kb, (1, fan_out), jnp.float32, -bound, bound)
        return w, b

    keys = jax.random.split(key, 6)
    w1, b1 = linear(keys[0], in_dim, hidden)
    w2, b2 = linear(keys[1], hidden, hidden)
    w3, b3 = linear(keys[2], hidden, 1)
    w4, b4 = linear(keys[3], in_dim, hidden)
    w5, b5 = linear(keys[4], hidden, hidden)
    w6, b6 = linear(keys[5], hidden, 1)
    return (w1, b1, w2, b2, w3, b3, w4, b4, w5, b5, w6, b6)


def critic1_reference(state, action, params):
    """Plain-JAX reference identical to the PyTorch forward()."""
    (w1, b1, w2, b2, w3, b3, w4, b4, w5, b5, w6, b6) = params
    sa = jnp.concatenate([state, action], axis=1)
    h = jax.nn.relu(sa @ w1 + b1)
    h = jax.nn.relu(h @ w2 + b2)
    q1 = h @ w3 + b3
    g = jax.nn.relu(sa @ w4 + b4)
    g = jax.nn.relu(g @ w5 + b5)
    q2 = g @ w6 + b6
    return q1, q2


if __name__ == "__main__":
    key = jax.random.PRNGKey(0)
    k_state, k_action, k_params, k_state2, k_action2 = jax.random.split(key, 5)

    state_dim, action_dim = 12, 4
    params = init_critic1_params(k_params, state_dim, action_dim)
    packed = pack_critic1_params(params, state_dim)          # f32 (v5e-safe)
    # For v6e/v7x: packed = pack_critic1_params(params, state_dim, dtype=jnp.bfloat16)

    # --- small batch: single tile, grid=(1,) ---
    B = 8
    state = jax.random.normal(k_state, (B, state_dim), jnp.float32)
    action = jax.random.normal(k_action, (B, action_dim), jnp.float32)
    q1, q2 = critic1_forward(state, action, packed)
    jax.block_until_ready((q1, q2))

    q1_ref, q2_ref = critic1_reference(state, action, params)
    assert q1.shape == (B, 1) and q2.shape == (B, 1)
    assert jnp.allclose(q1, q1_ref, atol=1e-4, rtol=1e-4)
    assert jnp.allclose(q2, q2_ref, atol=1e-4, rtol=1e-4)

    # --- larger non-multiple batch: exercises padding + parallel batch grid ---
    B2 = 1000
    state2 = jax.random.normal(k_state2, (B2, state_dim), jnp.float32)
    action2 = jax.random.normal(k_action2, (B2, action_dim), jnp.float32)
    q1b, q2b = critic1_forward(state2, action2, packed, block_b=512)
    jax.block_until_ready((q1b, q2b))

    q1b_ref, q2b_ref = critic1_reference(state2, action2, params)
    assert q1b.shape == (B2, 1) and q2b.shape == (B2, 1)
    assert jnp.allclose(q1b, q1b_ref, atol=5e-4, rtol=5e-4)
    assert jnp.allclose(q2b, q2b_ref, atol=5e-4, rtol=5e-4)

    print("KERNEL_OK")
</pallas_src>

<mosaic_0001>
module attributes {stable_mosaic.version = 11 : i64} {
  func.func @_critic1_kernel(%arg0: i32, %arg1: memref<8x12xf32, #tpu.memory_space<vmem>>, %arg2: memref<8x4xf32, #tpu.memory_space<vmem>>, %arg3: memref<12x512xf32, #tpu.memory_space<vmem>>, %arg4: memref<4x512xf32, #tpu.memory_space<vmem>>, %arg5: memref<1x512xf32, #tpu.memory_space<vmem>>, %arg6: memref<512x512xf32, #tpu.memory_space<vmem>>, %arg7: memref<1x512xf32, #tpu.memory_space<vmem>>, %arg8: memref<512x2xf32, #tpu.memory_space<vmem>>, %arg9: memref<2xf32, #tpu.memory_space<smem>>, %arg10: memref<8x2xf32, #tpu.memory_space<vmem>>) attributes {dimension_semantics = [#tpu.dimension_semantics<parallel>], iteration_bounds = array<i64: 1>, scalar_prefetch = 0 : i64, scratch_operands = 0 : i64, tpu.core_type = #tpu.core_type<tc>, window_params = [{transform_indices = @transform_0, window_bounds = array<i64: 8, 12>}, {transform_indices = @transform_1, window_bounds = array<i64: 8, 4>}, {pipeline_mode = #tpu.pipeline_mode<synchronous>, transform_indices = @transform_2, window_bounds = array<i64: 12, 512>}, {pipeline_mode = #tpu.pipeline_mode<synchronous>, transform_indices = @transform_3, window_bounds = array<i64: 4, 512>}, {pipeline_mode = #tpu.pipeline_mode<synchronous>, transform_indices = @transform_4, window_bounds = array<i64: 1, 512>}, {pipeline_mode = #tpu.pipeline_mode<synchronous>, transform_indices = @transform_5, window_bounds = array<i64: 512, 512>}, {pipeline_mode = #tpu.pipeline_mode<synchronous>, transform_indices = @transform_6, window_bounds = array<i64: 1, 512>}, {pipeline_mode = #tpu.pipeline_mode<synchronous>, transform_indices = @transform_7, window_bounds = array<i64: 512, 2>}, {transform_indices = @transform_8, window_bounds = array<i64: 2>}, {transform_indices = @transform_9, window_bounds = array<i64: 8, 2>}]} {
    %c0 = arith.constant 0 : index
    %c0_0 = arith.constant 0 : index
    %0 = vector.load %arg1[%c0, %c0_0] : memref<8x12xf32, #tpu.memory_space<vmem>>, vector<8x12xf32>
    %c0_1 = arith.constant 0 : index
    %c0_2 = arith.constant 0 : index
    %1 = vector.load %arg3[%c0_1, %c0_2] : memref<12x512xf32, #tpu.memory_space<vmem>>, vector<12x512xf32>
    %cst = arith.constant dense<0.000000e+00> : vector<8x512xf32>
    %2 = tpu.matmul %0, %1, %cst {dimension_numbers = #tpu.dot_dimension_numbers<[1], [0], [0], [1], [0, 0, 1, 1], [], []>} : vector<8x12xf32>, vector<12x512xf32>, vector<8x512xf32> -> vector<8x512xf32>
    %c0_3 = arith.constant 0 : index
    %c0_4 = arith.constant 0 : index
    %3 = vector.load %arg2[%c0_3, %c0_4] : memref<8x4xf32, #tpu.memory_space<vmem>>, vector<8x4xf32>
    %c0_5 = arith.constant 0 : index
    %c0_6 = arith.constant 0 : index
    %4 = vector.load %arg4[%c0_5, %c0_6] : memref<4x512xf32, #tpu.memory_space<vmem>>, vector<4x512xf32>
    %cst_7 = arith.constant dense<0.000000e+00> : vector<8x512xf32>
    %5 = tpu.matmul %3, %4, %cst_7 {dimension_numbers = #tpu.dot_dimension_numbers<[1], [0], [0], [1], [0, 0, 1, 1], [], []>} : vector<8x4xf32>, vector<4x512xf32>, vector<8x512xf32> -> vector<8x512xf32>
    %6 = arith.addf %2, %5 : vector<8x512xf32>
    %c0_8 = arith.constant 0 : index
    %c0_9 = arith.constant 0 : index
    %7 = vector.load %arg5[%c0_8, %c0_9] : memref<1x512xf32, #tpu.memory_space<vmem>>, vector<1x512xf32>
    %8 = vector.broadcast %7 : vector<1x512xf32> to vector<8x512xf32>
    %9 = arith.addf %6, %8 : vector<8x512xf32>
    %cst_10 = arith.constant 0.000000e+00 : f32
    %10 = vector.broadcast %cst_10 : f32 to vector<8x512xf32>
    %11 = arith.maximumf %9, %10 : vector<8x512xf32>
    %c0_11 = arith.constant 0 : index
    %c0_12 = arith.constant 0 : index
    %12 = vector.load %arg6[%c0_11, %c0_12] : memref<512x512xf32, #tpu.memory_space<vmem>>, vector<512x512xf32>
    %cst_13 = arith.constant dense<0.000000e+00> : vector<8x512xf32>
    %13 = tpu.matmul %11, %12, %cst_13 {dimension_numbers = #tpu.dot_dimension_numbers<[1], [0], [0], [1], [0, 0, 1, 1], [], []>} : vector<8x512xf32>, vector<512x512xf32>, vector<8x512xf32> -> vector<8x512xf32>
    %c0_14 = arith.constant 0 : index
    %c0_15 = arith.constant 0 : index
    %14 = vector.load %arg7[%c0_14, %c0_15] : memref<1x512xf32, #tpu.memory_space<vmem>>, vector<1x512xf32>
    %15 = vector.broadcast %14 : vector<1x512xf32> to vector<8x512xf32>
    %16 = arith.addf %13, %15 : vector<8x512xf32>
    %cst_16 = arith.constant 0.000000e+00 : f32
    %17 = vector.broadcast %cst_16 : f32 to vector<8x512xf32>
    %18 = arith.maximumf %16, %17 : vector<8x512xf32>
    %c0_17 = arith.constant 0 : index
    %c0_18 = arith.constant 0 : index
    %19 = vector.load %arg8[%c0_17, %c0_18] : memref<512x2xf32, #tpu.memory_space<vmem>>, vector<512x2xf32>
    %cst_19 = arith.constant dense<0.000000e+00> : vector<8x2xf32>
    %20 = tpu.matmul %18, %19, %cst_19 {dimension_numbers = #tpu.dot_dimension_numbers<[1], [0], [0], [1], [0, 0, 1, 1], [], []>} : vector<8x512xf32>, vector<512x2xf32>, vector<8x2xf32> -> vector<8x2xf32>
    %21 = tpu.iota {dimensions = array<i32: 1>} : vector<8x2xi32>
    %c0_i32 = arith.constant 0 : i32
    %22 = vector.broadcast %c0_i32 : i32 to vector<8x2xi32>
    %23 = arith.cmpi eq, %21, %22 : vector<8x2xi32>
    %c0_20 = arith.constant 0 : index
    %24 = memref.load %arg9[%c0_20] : memref<2xf32, #tpu.memory_space<smem>>
    %c1 = arith.constant 1 : index
    %25 = memref.load %arg9[%c1] : memref<2xf32, #tpu.memory_space<smem>>
    %26 = vector.broadcast %24 : f32 to vector<8x2xf32>
    %27 = vector.broadcast %25 : f32 to vector<8x2xf32>
    %28 = arith.select %23, %26, %27 : vector<8x2xi1>, vector<8x2xf32>
    %29 = arith.addf %20, %28 : vector<8x2xf32>
    %c0_21 = arith.constant 0 : index
    %c0_22 = arith.constant 0 : index
    %30 = vector.load %arg10[%c0_21, %c0_22] : memref<8x2xf32, #tpu.memory_space<vmem>>, vector<8x2xf32>
    tpu.vector_store %arg10[%c0_21, %c0_22], %29 {strides = array<i32>} : memref<8x2xf32, #tpu.memory_space<vmem>>, vector<8x2xf32>,
    return
  }
  func.func @transform_0(%arg0: i32) -> (i32, i32) {
    %c0_i32 = arith.constant 0 : i32
    %c0_i32_0 = arith.constant 0 : i32
    return %arg0, %c0_i32 : i32, i32
  }
  func.func @transform_1(%arg0: i32) -> (i32, i32) {
    %c0_i32 = arith.constant 0 : i32
    %c0_i32_0 = arith.constant 0 : i32
    return %arg0, %c0_i32 : i32, i32
  }
  func.func @transform_2(%arg0: i32) -> (i32, i32) {
    %c0_i32 = arith.constant 0 : i32
    %c0_i32_0 = arith.constant 0 : i32
    %c0_i32_1 = arith.constant 0 : i32
    return %c0_i32, %c0_i32_0 : i32, i32
  }
  func.func @transform_3(%arg0: i32) -> (i32, i32) {
    %c0_i32 = arith.constant 0 : i32
    %c0_i32_0 = arith.constant 0 : i32
    %c0_i32_1 = arith.constant 0 : i32
    return %c0_i32, %c0_i32_0 : i32, i32
  }
  func.func @transform_4(%arg0: i32) -> (i32, i32) {
    %c0_i32 = arith.constant 0 : i32
    %c0_i32_0 = arith.constant 0 : i32
    %c0_i32_1 = arith.constant 0 : i32
    return %c0_i32, %c0_i32_0 : i32, i32
  }
  func.func @transform_5(%arg0: i32) -> (i32, i32) {
    %c0_i32 = arith.constant 0 : i32
    %c0_i32_0 = arith.constant 0 : i32
    %c0_i32_1 = arith.constant 0 : i32
    return %c0_i32, %c0_i32_0 : i32, i32
  }
  func.func @transform_6(%arg0: i32) -> (i32, i32) {
    %c0_i32 = arith.constant 0 : i32
    %c0_i32_0 = arith.constant 0 : i32
    %c0_i32_1 = arith.constant 0 : i32
    return %c0_i32, %c0_i32_0 : i32, i32
  }
  func.func @transform_7(%arg0: i32) -> (i32, i32) {
    %c0_i32 = arith.constant 0 : i32
    %c0_i32_0 = arith.constant 0 : i32
    %c0_i32_1 = arith.constant 0 : i32
    return %c0_i32, %c0_i32_0 : i32, i32
  }
  func.func @transform_8(%arg0: i32) -> i32 {
    %c0_i32 = arith.constant 0 : i32
    %c0_i32_0 = arith.constant 0 : i32
    return %c0_i32 : i32
  }
  func.func @transform_9(%arg0: i32) -> (i32, i32) {
    %c0_i32 = arith.constant 0 : i32
    %c0_i32_0 = arith.constant 0 : i32
    return %arg0, %c0_i32 : i32, i32
  }
}

</mosaic_0001>

<bundles_post_ra>
// kernel: tpu_custom_call.1
= control target key start
LH: loop header
LB: loop body
LE: loop exit
PB: predicated region body
PF: predicated region fallthrough
CT: control target
= control target key end

     0   :  { %14 = vsyncpa [#allocation3], 0  ;;  %s1674_s0 = inlined_call_operand.vmem [shape: f32[8,12], index: 0, kind: input, shape index: {}]   ;;  %s1675_s1 = inlined_call_operand.vmem [shape: f32[8,4], index: 1, kind: input, shape index: {}]   ;;  %s1676_s2 = inlined_call_operand.vmem [shape: f32[12,512], index: 2, kind: input, shape index: {}]   ;;  %s1677_s3 = inlined_call_operand.vmem [shape: f32[4,512], index: 3, kind: input, shape index: {}]   ;;  %s1678_s4 = inlined_call_operand.vmem [shape: f32[1,512], index: 4, kind: input, shape index: {}]   ;;  %s1679_s5 = inlined_call_operand.hbm [shape: f32[512,512], index: 5, kind: input, shape index: {}]   ;;  %s1680_s6 = inlined_call_operand.vmem [shape: f32[1,512], index: 6, kind: input, shape index: {}]   ;;  %s1681_s7 = inlined_call_operand.vmem [shape: f32[512,2], index: 7, kind: input, shape index: {}]   ;;  %s1682_s8 = inlined_call_operand.vmem [shape: f32[2], index: 8, kind: input, shape index: {}]   ;;  %s1683_s9 = inlined_call_operand.vmem [shape: f32[8,2], index: 9, kind: output, shape index: {}]  }
   0x1   :  { %15 = vsyncpa [#allocation4], 0  ;;  %s1330_s30 = smov [#allocation2]   ;;  %s48_s13 = sshll.u32 %s1682_s8, 4  ;;  %s49_s13 = int_to_ptr.vmem [resolvable:$true] %s48_s13 }
   0x2   :  { %s31_s10 = sshll.u32 %s1330_s30, 4  ;;  %s32_s10 = int_to_ptr.vmem [resolvable:$true] %s31_s10 }
   0x3   :  { %s1302_s14 = scalar_lea.vmem %s32_s10, 32768  ;;  %p1307_p1 = scmp.lt.s32.totalorder %s32_s10, %s32_s10 }
   0x4   :  { %p1303_p0 = scmp.ne.s32.totalorder %s32_s10, %s1302_s14  ;;  %p1308_p2 = scmp.lt.s32.totalorder %s1302_s14, %s1302_s14 }
   0x6   :  { %p1309_p3 = por %p1308_p2, %p1307_p1 }
   0x8   :  { %p1310_p4 = pnand %p1309_p3, %p1303_p0 }
   0xa   :  { %1313 = shalt.err (!%p1310_p4)
}
   0xb   :  { %s1331_s15 = smov 512   ;;  %s1332_s16 = smov 32  }
   0xc   :  { %37 = dma.hbm_to_vmem [thread:$0]  %s1679_s5, 32768, %s32_s10, [#allocation3], %s1331_s15, %s1331_s15, %s1332_s16  }
   0xd   :  { %s1314_s19 = scalar_lea.vmem %s49_s13, 16  ;;  %p1319_p6 = scmp.lt.s32.totalorder %s49_s13, %s49_s13 }
   0xe   :  { %p1315_p5 = scmp.ne.s32.totalorder %s49_s13, %s1314_s19  ;;  %p1320_p7 = scmp.lt.s32.totalorder %s1314_s19, %s1314_s19 }
  0x10   :  { %p1321_p8 = por %p1320_p7, %p1319_p6 }
  0x12   :  { %p1322_p9 = pnand %p1321_p8, %p1315_p5 }
  0x14   :  { %1325 = shalt.err (!%p1322_p9)
}
  0x15   :  { %s1333_s8 = smov [#allocation5]  }
  0x16   :  { %51 = dma.vmem_to_smem %s49_s13, 16, %s1333_s8, [#allocation4]  }
  0x17   :  { %1326 = dma.done.wait [#allocation3], 32768  }
  0x18   :  { %1327 = vsyncadd [#allocation3], 4294934528 }
  0x19   :  { %1328 = dma.done.wait [#allocation4], 16  }
  0x1a   :  { %1329 = vsyncadd [#allocation4], 4294967280 }
  0x1b   :  { %58 = sfence }
  0x1c   :  { %v69_v0 = vld [vmem:[%s1677_s3] sm:$0xff]  ;;  %vm79_vm0 = vcmask 1043456   ;;  %v70_v1 = vld [vmem:[%s1677_s3 + $0x8] sm:$0xff]  ;;  %v1334_v4 = vmov 0.0   ;;  %vm75_vm1 = vcmask 31744   ;;  %v63_v11 = vld [vmem:[%s1676_s2 + $0x18] sm:$0xff] }
  0x1d   :  { %v73_v2 = vcombine.high %v69_v0, %v69_v0  ;;  %v74_v3 = vcombine.high %v70_v1, %v70_v1  ;;  %152 = vmatprep.mubr.f32.mxu0 %v1334_v4  ;;  %223 = vmatprep.mubr.f32.mxu1 %v1334_v4  ;;  %v68_v5 = vld [vmem:[%s1675_s1] sm:$0xff]  ;;  %v65_v6 = vld [vmem:[%s1676_s2 + $0x28] sm:$0xf]  ;;  %v67_v7 = vld [vmem:[%s1676_s2 + $0x38] sm:$0xf]  ;;  %vm230_vm2 = vcmask 97280  }
  0x1e   :  { %v64_v8 = vld [vmem:[%s1676_s2 + $0x20] sm:$0xf]  ;;  %v66_v9 = vld [vmem:[%s1676_s2 + $0x30] sm:$0xf]  ;;  %v61_v10 = vld [vmem:[%s1676_s2 + $0x8] sm:$0xff]  ;;  %vm1196_vm4 = vcmask 15360  }
  0x1f   :  { %1204 = vmatprep.subr.msk.mxu0 %vm79_vm0, %v73_v2  ;;  %1207 = vmatprep.subr.msk.mxu1 %vm79_vm0, %v74_v3  ;;  %v60_v12 = vld [vmem:[%s1676_s2] sm:$0xff]  ;;  %v62_v13 = vld [vmem:[%s1676_s2 + $0x10] sm:$0xff]  ;;  %v479_v15 = vld [vmem:[#allocation2 + $0x1e8] sm:$0xff] }
  0x20   :  { %1205 = vmatpush1.msk.msra.mxu0 %vm79_vm0, %v69_v0  ;;  %1208 = vmatpush1.msk.msra.mxu1 %vm79_vm0, %v70_v1  ;;  %v59_v14 = vld [vmem:[%s1674_s0] sm:$0xff]  ;;  %v607_v16 = vld [vmem:[#allocation2 + $0x5e8] sm:$0xff] }
  0x21   :  { %1206 = vmatmul.mubr.msk.f32.vlgmr.msra.gmra.mxu0 %vm75_vm1, %v68_v5  ;;  %1209 = vmatmul.mubr.msk.f32.vlgmr.msra.gmra.mxu1 %vm75_vm1, %v68_v5  ;;  %v478_v17 = vld [vmem:[#allocation2 + $0x1e0] sm:$0xff]  ;;  %v475_v19 = vld [vmem:[#allocation2 + $0x1c8] sm:$0xff] }
  0x22   :  { %1210 = vmatprep.subr.msk.mxu0 %vm79_vm0, %v65_v6  ;;  %1213 = vmatprep.subr.msk.mxu1 %vm79_vm0, %v67_v7  ;;  %v606_v18 = vld [vmem:[#allocation2 + $0x5e0] sm:$0xff]  ;;  %v603_v20 = vld [vmem:[#allocation2 + $0x5c8] sm:$0xff] }
  0x23   :  { %1211 = vmatpush1.msk.msra.mxu0 %vm79_vm0, %v64_v8  ;;  %1214 = vmatpush1.msk.msra.mxu1 %vm79_vm0, %v66_v9  ;;  %v474_v21 = vld [vmem:[#allocation2 + $0x1c0] sm:$0xff]  ;;  %v471_v23 = vld [vmem:[#allocation2 + $0x1a8] sm:$0xff] }
  0x24   :  { %276 = vmatprep.subr.mxu0 %v61_v10  ;;  %347 = vmatprep.subr.mxu1 %v63_v11  ;;  %v602_v22 = vld [vmem:[#allocation2 + $0x5c0] sm:$0xff]  ;;  %v599_v24 = vld [vmem:[#allocation2 + $0x5a8] sm:$0xff] }
  0x25   :  { %277 = vmatpush1.msra.mxu0 %v60_v12  ;;  %310 = vmatprep.mubr.f32.mxu0 %v1334_v4  ;;  %v470_v25 = vld [vmem:[#allocation2 + $0x1a0] sm:$0xff]  ;;  %v467_v27 = vld [vmem:[#allocation2 + $0x188] sm:$0xff] }
  0x26   :  { %348 = vmatpush1.msra.mxu1 %v62_v13  ;;  %381 = vmatprep.mubr.f32.mxu1 %v1334_v4  ;;  %v598_v26 = vld [vmem:[#allocation2 + $0x5a0] sm:$0xff]  ;;  %v595_v28 = vld [vmem:[#allocation2 + $0x588] sm:$0xff] }
  0x27   :  { %1212 = vmatmul.mubr.msk.f32.vlgmr.msra.gmra.mxu0 %vm230_vm2, %v59_v14  ;;  %1215 = vmatmul.mubr.msk.f32.vlgmr.msra.gmra.mxu1 %vm230_vm2, %v59_v14  ;;  %v466_v29 = vld [vmem:[#allocation2 + $0x180] sm:$0xff]  ;;  %v463_v31 = vld [vmem:[#allocation2 + $0x168] sm:$0xff] }
  0x28   :  { %696 = vmatprep.subr.mxu0 %v479_v15  ;;  %767 = vmatprep.subr.mxu1 %v607_v16  ;;  %v594_v30 = vld [vmem:[#allocation2 + $0x580] sm:$0xff]  ;;  %v591_v32 = vld [vmem:[#allocation2 + $0x568] sm:$0xff] }
  0x29   :  { %697 = vmatpush1.msra.mxu0 %v478_v17  ;;  %768 = vmatpush1.msra.mxu1 %v606_v18  ;;  %v462_v33 = vld [vmem:[#allocation2 + $0x160] sm:$0xff]  ;;  %v459_v35 = vld [vmem:[#allocation2 + $0x148] sm:$0xff] }
  0x2a   :  { %698 = vmatprep.subr.mxu0 %v475_v19  ;;  %769 = vmatprep.subr.mxu1 %v603_v20  ;;  %v590_v34 = vld [vmem:[#allocation2 + $0x560] sm:$0xff]  ;;  %v587_v36 = vld [vmem:[#allocation2 + $0x548] sm:$0xff] }
  0x2b   :  { %699 = vmatpush1.msra.mxu0 %v474_v21  ;;  %770 = vmatpush1.msra.mxu1 %v602_v22  ;;  %v458_v37 = vld [vmem:[#allocation2 + $0x140] sm:$0xff]  ;;  %v455_v39 = vld [vmem:[#allocation2 + $0x128] sm:$0xff] }
  0x2c   :  { %700 = vmatprep.subr.mxu0 %v471_v23  ;;  %771 = vmatprep.subr.mxu1 %v599_v24  ;;  %v586_v38 = vld [vmem:[#allocation2 + $0x540] sm:$0xff]  ;;  %v583_v40 = vld [vmem:[#allocation2 + $0x528] sm:$0xff] }
  0x2d   :  { %701 = vmatpush1.msra.mxu0 %v470_v25  ;;  %772 = vmatpush1.msra.mxu1 %v598_v26  ;;  %v454_v41 = vld [vmem:[#allocation2 + $0x120] sm:$0xff]  ;;  %v451_v43 = vld [vmem:[#allocation2 + $0x108] sm:$0xff] }
  0x2e   :  { %702 = vmatprep.subr.mxu0 %v467_v27  ;;  %773 = vmatprep.subr.mxu1 %v595_v28  ;;  %v582_v42 = vld [vmem:[#allocation2 + $0x520] sm:$0xff]  ;;  %v579_v44 = vld [vmem:[#allocation2 + $0x508] sm:$0xff] }
  0x2f   :  { %703 = vmatpush1.msra.mxu0 %v466_v29  ;;  %774 = vmatpush1.msra.mxu1 %v594_v30  ;;  %v450_v45 = vld [vmem:[#allocation2 + $0x100] sm:$0xff]  ;;  %v447_v47 = vld [vmem:[#allocation2 + $0xe8] sm:$0xff] }
  0x30   :  { %704 = vmatprep.subr.mxu0 %v463_v31  ;;  %775 = vmatprep.subr.mxu1 %v591_v32  ;;  %v578_v46 = vld [vmem:[#allocation2 + $0x500] sm:$0xff]  ;;  %v575_v48 = vld [vmem:[#allocation2 + $0x4e8] sm:$0xff] }
  0x31   :  { %705 = vmatpush1.msra.mxu0 %v462_v33  ;;  %776 = vmatpush1.msra.mxu1 %v590_v34  ;;  %v446_v49 = vld [vmem:[#allocation2 + $0xe0] sm:$0xff]  ;;  %v443_v51 = vld [vmem:[#allocation2 + $0xc8] sm:$0xff] }
  0x32   :  { %706 = vmatprep.subr.mxu0 %v459_v35  ;;  %777 = vmatprep.subr.mxu1 %v587_v36  ;;  %v574_v50 = vld [vmem:[#allocation2 + $0x4e0] sm:$0xff]  ;;  %v571_v52 = vld [vmem:[#allocation2 + $0x4c8] sm:$0xff] }
  0x33   :  { %707 = vmatpush1.msra.mxu0 %v458_v37  ;;  %778 = vmatpush1.msra.mxu1 %v586_v38  ;;  %v442_v53 = vld [vmem:[#allocation2 + $0xc0] sm:$0xff]  ;;  %v439_v55 = vld [vmem:[#allocation2 + $0xa8] sm:$0xff] }
  0x34   :  { %708 = vmatprep.subr.mxu0 %v455_v39  ;;  %779 = vmatprep.subr.mxu1 %v583_v40  ;;  %v570_v54 = vld [vmem:[#allocation2 + $0x4c0] sm:$0xff]  ;;  %v567_v56 = vld [vmem:[#allocation2 + $0x4a8] sm:$0xff] }
  0x35   :  { %709 = vmatpush1.msra.mxu0 %v454_v41  ;;  %780 = vmatpush1.msra.mxu1 %v582_v42  ;;  %v438_v57 = vld [vmem:[#allocation2 + $0xa0] sm:$0xff]  ;;  %v435_v59 = vld [vmem:[#allocation2 + $0x88] sm:$0xff] }
  0x36   :  { %710 = vmatprep.subr.mxu0 %v451_v43  ;;  %781 = vmatprep.subr.mxu1 %v579_v44  ;;  %v566_v58 = vld [vmem:[#allocation2 + $0x4a0] sm:$0xff]  ;;  %v563_v60 = vld [vmem:[#allocation2 + $0x488] sm:$0xff] }
  0x37   :  { %711 = vmatpush1.msra.mxu0 %v450_v45  ;;  %782 = vmatpush1.msra.mxu1 %v578_v46  ;;  %v434_v61 = vld [vmem:[#allocation2 + $0x80] sm:$0xff]  ;;  %v431_v63 = vld [vmem:[#allocation2 + $0x68] sm:$0xff] }
  0x38   :  { %712 = vmatprep.subr.mxu0 %v447_v47  ;;  %783 = vmatprep.subr.mxu1 %v575_v48  ;;  %v562_v62 = vld [vmem:[#allocation2 + $0x480] sm:$0xff]  ;;  %v559_v0 = vld [vmem:[#allocation2 + $0x468] sm:$0xff] }
  0x39   :  { %713 = vmatpush1.msra.mxu0 %v446_v49  ;;  %784 = vmatpush1.msra.mxu1 %v574_v50  ;;  %v430_v1 = vld [vmem:[#allocation2 + $0x60] sm:$0xff]  ;;  %v427_v3 = vld [vmem:[#allocation2 + $0x48] sm:$0xff] }
  0x3a   :  { %714 = vmatprep.subr.mxu0 %v443_v51  ;;  %785 = vmatprep.subr.mxu1 %v571_v52  ;;  %v558_v2 = vld [vmem:[#allocation2 + $0x460] sm:$0xff]  ;;  %v555_v4 = vld [vmem:[#allocation2 + $0x448] sm:$0xff] }
  0x3b   :  { %715 = vmatpush1.msra.mxu0 %v442_v53  ;;  %786 = vmatpush1.msra.mxu1 %v570_v54  ;;  %v426_v5 = vld [vmem:[#allocation2 + $0x40] sm:$0xff]  ;;  %v423_v7 = vld [vmem:[#allocation2 + $0x28] sm:$0xff] }
  0x3c   :  { %716 = vmatprep.subr.mxu0 %v439_v55  ;;  %787 = vmatprep.subr.mxu1 %v567_v56  ;;  %v554_v6 = vld [vmem:[#allocation2 + $0x440] sm:$0xff]  ;;  %v551_v8 = vld [vmem:[#allocation2 + $0x428] sm:$0xff] }
  0x3d   :  { %717 = vmatpush1.msra.mxu0 %v438_v57  ;;  %788 = vmatpush1.msra.mxu1 %v566_v58  ;;  %v422_v9 = vld [vmem:[#allocation2 + $0x20] sm:$0xff]  ;;  %v419_v11 = vld [vmem:[#allocation2 + $0x8] sm:$0xff] }
  0x3e   :  { %718 = vmatprep.subr.mxu0 %v435_v59  ;;  %789 = vmatprep.subr.mxu1 %v563_v60  ;;  %v550_v10 = vld [vmem:[#allocation2 + $0x420] sm:$0xff]  ;;  %v547_v12 = vld [vmem:[#allocation2 + $0x408] sm:$0xff] }
  0x3f   :  { %719 = vmatpush1.msra.mxu0 %v434_v61  ;;  %790 = vmatpush1.msra.mxu1 %v562_v62  ;;  %v418_v13 = vld [vmem:[#allocation2] sm:$0xff]  ;;  %v543_v15 = vld [vmem:[#allocation2 + $0x3e8] sm:$0xff] }
  0x40   :  { %720 = vmatprep.subr.mxu0 %v431_v63  ;;  %791 = vmatprep.subr.mxu1 %v559_v0  ;;  %v546_v14 = vld [vmem:[#allocation2 + $0x400] sm:$0xff]  ;;  %v671_v16 = vld [vmem:[#allocation2 + $0x7e8] sm:$0xff] }
  0x41   :  { %721 = vmatpush1.msra.mxu0 %v430_v1  ;;  %792 = vmatpush1.msra.mxu1 %v558_v2  ;;  %v542_v17 = vld [vmem:[#allocation2 + $0x3e0] sm:$0xff]  ;;  %v539_v19 = vld [vmem:[#allocation2 + $0x3c8] sm:$0xff] }
  0x42   :  { %722 = vmatprep.subr.mxu0 %v427_v3  ;;  %793 = vmatprep.subr.mxu1 %v555_v4  ;;  %v670_v18 = vld [vmem:[#allocation2 + $0x7e0] sm:$0xff]  ;;  %v667_v20 = vld [vmem:[#allocation2 + $0x7c8] sm:$0xff] }
  0x43   :  { %723 = vmatpush1.msra.mxu0 %v426_v5  ;;  %794 = vmatpush1.msra.mxu1 %v554_v6  ;;  %v538_v21 = vld [vmem:[#allocation2 + $0x3c0] sm:$0xff]  ;;  %v535_v23 = vld [vmem:[#allocation2 + $0x3a8] sm:$0xff] }
  0x44   :  { %724 = vmatprep.subr.mxu0 %v423_v7  ;;  %795 = vmatprep.subr.mxu1 %v551_v8  ;;  %v666_v22 = vld [vmem:[#allocation2 + $0x7c0] sm:$0xff]  ;;  %v663_v24 = vld [vmem:[#allocation2 + $0x7a8] sm:$0xff] }
  0x45   :  { %725 = vmatpush1.msra.mxu0 %v422_v9  ;;  %796 = vmatpush1.msra.mxu1 %v550_v10  ;;  %v534_v25 = vld [vmem:[#allocation2 + $0x3a0] sm:$0xff]  ;;  %v531_v27 = vld [vmem:[#allocation2 + $0x388] sm:$0xff] }
  0x46   :  { %726 = vmatprep.subr.mxu0 %v419_v11  ;;  %797 = vmatprep.subr.mxu1 %v547_v12  ;;  %v662_v26 = vld [vmem:[#allocation2 + $0x7a0] sm:$0xff]  ;;  %v659_v28 = vld [vmem:[#allocation2 + $0x788] sm:$0xff] }
  0x47   :  { %727 = vmatpush1.msra.mxu0 %v418_v13  ;;  %798 = vmatpush1.msra.mxu1 %v546_v14  ;;  %v530_v29 = vld [vmem:[#allocation2 + $0x380] sm:$0xff]  ;;  %v527_v31 = vld [vmem:[#allocation2 + $0x368] sm:$0xff] }
  0x48   :  { %728 = vmatprep.subr.mxu0 %v543_v15  ;;  %799 = vmatprep.subr.mxu1 %v671_v16  ;;  %v658_v30 = vld [vmem:[#allocation2 + $0x780] sm:$0xff]  ;;  %v655_v32 = vld [vmem:[#allocation2 + $0x768] sm:$0xff]  ;;  %v481_v15 = vld [vmem:[#allocation2 + $0x1f8] sm:$0xff] }
  0x49   :  { %729 = vmatpush2.msra.mxu0 %v542_v17  ;;  %800 = vmatpush2.msra.mxu1 %v670_v18  ;;  %v526_v33 = vld [vmem:[#allocation2 + $0x360] sm:$0xff]  ;;  %v523_v35 = vld [vmem:[#allocation2 + $0x348] sm:$0xff]  ;;  %v609_v16 = vld [vmem:[#allocation2 + $0x5f8] sm:$0xff]  ;;  %v390_v17 = vlaneseq }
  0x4a   :  { %730 = vmatprep.subr.mxu0 %v539_v19  ;;  %801 = vmatprep.subr.mxu1 %v667_v20  ;;  %v654_v34 = vld [vmem:[#allocation2 + $0x760] sm:$0xff]  ;;  %v651_v36 = vld [vmem:[#allocation2 + $0x748] sm:$0xff] }
  0x4b   :  { %731 = vmatpush2.msra.mxu0 %v538_v21  ;;  %802 = vmatpush2.msra.mxu1 %v666_v22  ;;  %v522_v37 = vld [vmem:[#allocation2 + $0x340] sm:$0xff]  ;;  %v519_v39 = vld [vmem:[#allocation2 + $0x328] sm:$0xff]  ;;  %v1436_v18 = vshrl.u32 %v390_v17, 7 }
  0x4c   :  { %732 = vmatprep.subr.mxu0 %v535_v23  ;;  %803 = vmatprep.subr.mxu1 %v663_v24  ;;  %v650_v38 = vld [vmem:[#allocation2 + $0x740] sm:$0xff]  ;;  %v647_v40 = vld [vmem:[#allocation2 + $0x728] sm:$0xff] }
  0x4d   :  { %733 = vmatpush2.msra.mxu0 %v534_v25  ;;  %804 = vmatpush2.msra.mxu1 %v662_v26  ;;  %v518_v41 = vld [vmem:[#allocation2 + $0x320] sm:$0xff]  ;;  %v515_v43 = vld [vmem:[#allocation2 + $0x308] sm:$0xff]  ;;  %v392_v23 = vsub.s32 0, %v1436_v18  ;;  %v400_v24 = vsub.s32 2, %v1436_v18  ;;  %v396_v26 = vsub.s32 1, %v1436_v18 }
  0x4e   :  { %734 = vmatprep.subr.mxu0 %v531_v27  ;;  %805 = vmatprep.subr.mxu1 %v659_v28  ;;  %v646_v42 = vld [vmem:[#allocation2 + $0x720] sm:$0xff]  ;;  %v643_v44 = vld [vmem:[#allocation2 + $0x708] sm:$0xff]  ;;  %v404_v27 = vsub.s32 3, %v1436_v18 }
  0x4f   :  { %735 = vmatpush2.msra.mxu0 %v530_v29  ;;  %806 = vmatpush2.msra.mxu1 %v658_v30  ;;  %v514_v45 = vld [vmem:[#allocation2 + $0x300] sm:$0xff]  ;;  %v511_v47 = vld [vmem:[#allocation2 + $0x2e8] sm:$0xff] }
  0x50   :  { %736 = vmatprep.subr.mxu0 %v527_v31  ;;  %807 = vmatprep.subr.mxu1 %v655_v32  ;;  %v642_v46 = vld [vmem:[#allocation2 + $0x700] sm:$0xff]  ;;  %v639_v48 = vld [vmem:[#allocation2 + $0x6e8] sm:$0xff] }
  0x51   :  { %737 = vmatpush2.msra.mxu0 %v526_v33  ;;  %808 = vmatpush2.msra.mxu1 %v654_v34  ;;  %v510_v49 = vld [vmem:[#allocation2 + $0x2e0] sm:$0xff]  ;;  %v507_v51 = vld [vmem:[#allocation2 + $0x2c8] sm:$0xff] }
  0x52   :  { %738 = vmatprep.subr.mxu0 %v523_v35  ;;  %809 = vmatprep.subr.mxu1 %v651_v36  ;;  %v638_v50 = vld [vmem:[#allocation2 + $0x6e0] sm:$0xff]  ;;  %v635_v52 = vld [vmem:[#allocation2 + $0x6c8] sm:$0xff] }
  0x53   :  { %739 = vmatpush2.msra.mxu0 %v522_v37  ;;  %810 = vmatpush2.msra.mxu1 %v650_v38  ;;  %v506_v53 = vld [vmem:[#allocation2 + $0x2c0] sm:$0xff]  ;;  %v503_v55 = vld [vmem:[#allocation2 + $0x2a8] sm:$0xff] }
  0x54   :  { %740 = vmatprep.subr.mxu0 %v519_v39  ;;  %811 = vmatprep.subr.mxu1 %v647_v40  ;;  %v634_v54 = vld [vmem:[#allocation2 + $0x6c0] sm:$0xff]  ;;  %v631_v56 = vld [vmem:[#allocation2 + $0x6a8] sm:$0xff] }
  0x55   :  { %741 = vmatpush2.msra.mxu0 %v518_v41  ;;  %812 = vmatpush2.msra.mxu1 %v646_v42  ;;  %v502_v57 = vld [vmem:[#allocation2 + $0x2a0] sm:$0xff]  ;;  %v499_v59 = vld [vmem:[#allocation2 + $0x288] sm:$0xff] }
  0x56   :  { %742 = vmatprep.subr.mxu0 %v515_v43  ;;  %813 = vmatprep.subr.mxu1 %v643_v44  ;;  %v630_v58 = vld [vmem:[#allocation2 + $0x6a0] sm:$0xff]  ;;  %v627_v60 = vld [vmem:[#allocation2 + $0x688] sm:$0xff] }
  0x57   :  { %743 = vmatpush2.msra.mxu0 %v514_v45  ;;  %814 = vmatpush2.msra.mxu1 %v642_v46  ;;  %v498_v61 = vld [vmem:[#allocation2 + $0x280] sm:$0xff]  ;;  %v495_v63 = vld [vmem:[#allocation2 + $0x268] sm:$0xff] }
  0x58   :  { %744 = vmatprep.subr.mxu0 %v511_v47  ;;  %815 = vmatprep.subr.mxu1 %v639_v48  ;;  %v626_v62 = vld [vmem:[#allocation2 + $0x680] sm:$0xff]  ;;  %v623_v0 = vld [vmem:[#allocation2 + $0x668] sm:$0xff]  ;;  %v480_v48 = vld [vmem:[#allocation2 + $0x1f0] sm:$0xff] }
  0x59   :  { %745 = vmatpush2.msra.mxu0 %v510_v49  ;;  %816 = vmatpush2.msra.mxu1 %v638_v50  ;;  %v494_v1 = vld [vmem:[#allocation2 + $0x260] sm:$0xff]  ;;  %v491_v3 = vld [vmem:[#allocation2 + $0x248] sm:$0xff]  ;;  %v608_v49 = vld [vmem:[#allocation2 + $0x5f0] sm:$0xff] }
  0x5a   :  { %746 = vmatprep.subr.mxu0 %v507_v51  ;;  %817 = vmatprep.subr.mxu1 %v635_v52  ;;  %v622_v2 = vld [vmem:[#allocation2 + $0x660] sm:$0xff]  ;;  %v619_v4 = vld [vmem:[#allocation2 + $0x648] sm:$0xff]  ;;  %v477_v50 = vld [vmem:[#allocation2 + $0x1d8] sm:$0xff] }
  0x5b   :  { %747 = vmatpush2.msra.mxu0 %v506_v53  ;;  %818 = vmatpush2.msra.mxu1 %v634_v54  ;;  %v490_v5 = vld [vmem:[#allocation2 + $0x240] sm:$0xff]  ;;  %v487_v7 = vld [vmem:[#allocation2 + $0x228] sm:$0xff]  ;;  %v605_v51 = vld [vmem:[#allocation2 + $0x5d8] sm:$0xff] }
  0x5c   :  { %748 = vmatprep.subr.mxu0 %v503_v55  ;;  %819 = vmatprep.subr.mxu1 %v631_v56  ;;  %v618_v6 = vld [vmem:[#allocation2 + $0x640] sm:$0xff]  ;;  %v615_v8 = vld [vmem:[#allocation2 + $0x628] sm:$0xff]  ;;  %v476_v52 = vld [vmem:[#allocation2 + $0x1d0] sm:$0xff] }
  0x5d   :  { %749 = vmatpush2.msra.mxu0 %v502_v57  ;;  %820 = vmatpush2.msra.mxu1 %v630_v58  ;;  %v486_v9 = vld [vmem:[#allocation2 + $0x220] sm:$0xff]  ;;  %v483_v11 = vld [vmem:[#allocation2 + $0x208] sm:$0xff]  ;;  %v604_v53 = vld [vmem:[#allocation2 + $0x5d0] sm:$0xff] }
  0x5e   :  { %750 = vmatprep.subr.mxu0 %v499_v59  ;;  %821 = vmatprep.subr.mxu1 %v627_v60  ;;  %v614_v10 = vld [vmem:[#allocation2 + $0x620] sm:$0xff]  ;;  %v611_v12 = vld [vmem:[#allocation2 + $0x608] sm:$0xff]  ;;  %v473_v54 = vld [vmem:[#allocation2 + $0x1b8] sm:$0xff] }
  0x5f   :  { %751 = vmatpush2.msra.mxu0 %v498_v61  ;;  %822 = vmatpush2.msra.mxu1 %v626_v62  ;;  %v482_v13 = vld [vmem:[#allocation2 + $0x200] sm:$0xff]  ;;  %v601_v55 = vld [vmem:[#allocation2 + $0x5b8] sm:$0xff]  ;;  %v472_v56 = vld [vmem:[#allocation2 + $0x1b0] sm:$0xff] }
  0x60   :  { %752 = vmatprep.subr.mxu0 %v495_v63  ;;  %823 = vmatprep.subr.mxu1 %v623_v0  ;;  %v610_v14 = vld [vmem:[#allocation2 + $0x600] sm:$0xff]  ;;  %v600_v57 = vld [vmem:[#allocation2 + $0x5b0] sm:$0xff]  ;;  %v469_v58 = vld [vmem:[#allocation2 + $0x198] sm:$0xff] }
  0x61   :  { %753 = vmatpush2.msra.mxu0 %v494_v1  ;;  %824 = vmatpush2.msra.mxu1 %v622_v2  ;;  %v388_v25 = vld [vmem:[%s1678_s4] sm:$0xf]  ;;  %v597_v59 = vld [vmem:[#allocation2 + $0x598] sm:$0xff]  ;;  %v468_v60 = vld [vmem:[#allocation2 + $0x190] sm:$0xff] }
  0x62   :  { %754 = vmatprep.subr.mxu0 %v491_v3  ;;  %825 = vmatprep.subr.mxu1 %v619_v4  ;;  %v393_v29 = vrot.slane %v388_v25, %v392_v23  ;;  %v401_v31 = vrot.slane %v388_v25, %v400_v24  ;;  %v397_v34 = vrot.slane %v388_v25, %v396_v26  ;;  %v596_v61 = vld [vmem:[#allocation2 + $0x590] sm:$0xff]  ;;  %v465_v62 = vld [vmem:[#allocation2 + $0x178] sm:$0xff] }
  0x63   :  { %755 = vmatpush2.msra.mxu0 %v490_v5  ;;  %826 = vmatpush2.msra.mxu1 %v618_v6  ;;  %v405_v35 = vrot.slane %v388_v25, %v404_v27  ;;  %v593_v63 = vld [vmem:[#allocation2 + $0x578] sm:$0xff]  ;;  %v464_v0 = vld [vmem:[#allocation2 + $0x170] sm:$0xff] }
  0x64   :  { %756 = vmatprep.subr.mxu0 %v487_v7  ;;  %827 = vmatprep.subr.mxu1 %v615_v8  ;;  %v592_v1 = vld [vmem:[#allocation2 + $0x570] sm:$0xff]  ;;  %v461_v2 = vld [vmem:[#allocation2 + $0x158] sm:$0xff] }
  0x65   :  { %757 = vmatpush2.msra.mxu0 %v486_v9  ;;  %828 = vmatpush2.msra.mxu1 %v614_v10  ;;  %v589_v3 = vld [vmem:[#allocation2 + $0x558] sm:$0xff]  ;;  %v460_v4 = vld [vmem:[#allocation2 + $0x150] sm:$0xff] }
  0x66   :  { %758 = vmatprep.subr.mxu0 %v483_v11  ;;  %829 = vmatprep.subr.mxu1 %v611_v12  ;;  %v588_v5 = vld [vmem:[#allocation2 + $0x550] sm:$0xff]  ;;  %v457_v6 = vld [vmem:[#allocation2 + $0x138] sm:$0xff] }
  0x67   :  { %759 = vmatpush2.msra.mxu0 %v482_v13  ;;  %830 = vmatpush2.msra.mxu1 %v610_v14  ;;  %v585_v7 = vld [vmem:[#allocation2 + $0x538] sm:$0xff]  ;;  %v456_v8 = vld [vmem:[#allocation2 + $0x130] sm:$0xff] }
  0x68   :  { %838 = vmatprep.subr.mxu0 %v481_v15  ;;  %909 = vmatprep.subr.mxu1 %v609_v16  ;;  %v584_v9 = vld [vmem:[#allocation2 + $0x530] sm:$0xff]  ;;  %v453_v10 = vld [vmem:[#allocation2 + $0x118] sm:$0xff] }
  0x69   :  { %v581_v11 = vld [vmem:[#allocation2 + $0x518] sm:$0xff]  ;;  %v452_v12 = vld [vmem:[#allocation2 + $0x110] sm:$0xff] }
  0x6a   :  { %v580_v13 = vld [vmem:[#allocation2 + $0x510] sm:$0xff]  ;;  %v449_v14 = vld [vmem:[#allocation2 + $0xf8] sm:$0xff] }
  0x6b   :  { %v577_v15 = vld [vmem:[#allocation2 + $0x4f8] sm:$0xff]  ;;  %v448_v16 = vld [vmem:[#allocation2 + $0xf0] sm:$0xff] }
  0x6c   :  { %v572_v25 = vld [vmem:[#allocation2 + $0x4d0] sm:$0xff] }
  0xe1   :  { %v154_v19 = vpop.f32.mrf.mxu0  ;;  %v225_v20 = vpop.f32.mrf.mxu1 }
  0xe3   :  { %v156_v21 = vpop.f32.mrf.mxu0  ;;  %v227_v22 = vpop.f32.mrf.mxu1 }
  0xe7   :  { %v312_v28 = vpop.f32.mrf.mxu0  ;;  %v383_v30 = vpop.f32.mrf.mxu1 }
  0xe8   :  { %v313_v32 = vadd.f32 %v312_v28, %v154_v19  ;;  %v384_v33 = vadd.f32 %v383_v30, %v225_v20  ;;  %v576_v19 = vld [vmem:[#allocation2 + $0x4f0] sm:$0xff]  ;;  %v445_v20 = vld [vmem:[#allocation2 + $0xd8] sm:$0xff] }
  0xe9   :  { %v314_v36 = vpop.f32.mrf.mxu0  ;;  %v385_v37 = vpop.f32.mrf.mxu1  ;;  %v441_v28 = vld [vmem:[#allocation2 + $0xb8] sm:$0xff]  ;;  %v440_v30 = vld [vmem:[#allocation2 + $0xb0] sm:$0xff] }
  0xea   :  { %v315_v38 = vadd.f32 %v314_v36, %v156_v21  ;;  %v386_v39 = vadd.f32 %v385_v37, %v227_v22  ;;  %v1453_v40 = vadd.f32 %v393_v29, %v313_v32  ;;  %v1455_v41 = vadd.f32 %v401_v31, %v384_v33  ;;  %v573_v21 = vld [vmem:[#allocation2 + $0x4d8] sm:$0xff]  ;;  %v444_v22 = vld [vmem:[#allocation2 + $0xd0] sm:$0xff] }
  0xeb   :  { %v569_v29 = vld [vmem:[#allocation2 + $0x4b8] sm:$0xff]  ;;  %v568_v31 = vld [vmem:[#allocation2 + $0x4b0] sm:$0xff] }
  0xec   :  { %v411_v42 = vadd.f32 %v397_v34, %v315_v38  ;;  %v413_v43 = vadd.f32 %v405_v35, %v386_v39  ;;  %v414_v46 = vmax.f32 %v1453_v40, 0.0  ;;  %v416_v47 = vmax.f32 %v1455_v41, 0.0  ;;  %v437_v32 = vld [vmem:[#allocation2 + $0x98] sm:$0xff]  ;;  %v436_v34 = vld [vmem:[#allocation2 + $0x90] sm:$0xff]  ;;  %v997_v40 = vld [vmem:[%s1681_s7 + $0x68] sm:$0xff] }
  0xed   :  { %v565_v33 = vld [vmem:[#allocation2 + $0x498] sm:$0xff]  ;;  %v564_v35 = vld [vmem:[#allocation2 + $0x490] sm:$0xff]  ;;  %v1012_v41 = vld [vmem:[%s1681_s7 + $0xe0] sm:$0xff] }
  0xee   :  { %v415_v44 = vmax.f32 %v411_v42, 0.0  ;;  %v417_v45 = vmax.f32 %v413_v43, 0.0  ;;  %v433_v36 = vld [vmem:[#allocation2 + $0x78] sm:$0xff]  ;;  %v432_v38 = vld [vmem:[#allocation2 + $0x70] sm:$0xff] }
  0xef   :  { %v561_v37 = vld [vmem:[#allocation2 + $0x478] sm:$0xff]  ;;  %v560_v39 = vld [vmem:[#allocation2 + $0x470] sm:$0xff] }
  0xf0   :  { %760 = vmatprep.mubr.f32.mxu0 %v415_v44  ;;  %831 = vmatprep.mubr.f32.mxu1 %v417_v45  ;;  %v429_v42 = vld [vmem:[#allocation2 + $0x58] sm:$0xff] }
  0xf1   :  { %761 = vmatmul.mubr.f32.vlgmr.msra.gmra.mxu0 %v414_v46  ;;  %832 = vmatmul.mubr.f32.vlgmr.msra.gmra.mxu1 %v416_v47  ;;  %v557_v43 = vld [vmem:[#allocation2 + $0x458] sm:$0xff] }
  0xf2   :  { %839 = vmatpush1.msra.mxu0 %v480_v48  ;;  %910 = vmatpush1.msra.mxu1 %v608_v49  ;;  %v425_v48 = vld [vmem:[#allocation2 + $0x38] sm:$0xff] }
  0xf3   :  { %840 = vmatprep.subr.mxu0 %v477_v50  ;;  %902 = vmatprep.mubr.f32.mxu0 %v415_v44  ;;  %v428_v44 = vld [vmem:[#allocation2 + $0x50] sm:$0xff]  ;;  %v553_v49 = vld [vmem:[#allocation2 + $0x438] sm:$0xff] }
  0xf4   :  { %911 = vmatprep.subr.mxu1 %v605_v51  ;;  %973 = vmatprep.mubr.f32.mxu1 %v417_v45  ;;  %v556_v45 = vld [vmem:[#allocation2 + $0x450] sm:$0xff] }
  0xf5   :  { %841 = vmatpush1.msra.mxu0 %v476_v52  ;;  %912 = vmatpush1.msra.mxu1 %v604_v53  ;;  %v424_v50 = vld [vmem:[#allocation2 + $0x30] sm:$0xff]  ;;  %v421_v52 = vld [vmem:[#allocation2 + $0x18] sm:$0xff] }
  0xf6   :  { %842 = vmatprep.subr.mxu0 %v473_v54  ;;  %913 = vmatprep.subr.mxu1 %v601_v55  ;;  %v552_v51 = vld [vmem:[#allocation2 + $0x430] sm:$0xff]  ;;  %v549_v53 = vld [vmem:[#allocation2 + $0x418] sm:$0xff] }
  0xf7   :  { %843 = vmatpush1.msra.mxu0 %v472_v56  ;;  %914 = vmatpush1.msra.mxu1 %v600_v57  ;;  %v420_v54 = vld [vmem:[#allocation2 + $0x10] sm:$0xff]  ;;  %v545_v56 = vld [vmem:[#allocation2 + $0x3f8] sm:$0xff] }
  0xf8   :  { %844 = vmatprep.subr.mxu0 %v469_v58  ;;  %915 = vmatprep.subr.mxu1 %v597_v59  ;;  %v548_v55 = vld [vmem:[#allocation2 + $0x410] sm:$0xff]  ;;  %v673_v57 = vld [vmem:[#allocation2 + $0x7f8] sm:$0xff] }
  0xf9   :  { %845 = vmatpush1.msra.mxu0 %v468_v60  ;;  %916 = vmatpush1.msra.mxu1 %v596_v61  ;;  %v544_v58 = vld [vmem:[#allocation2 + $0x3f0] sm:$0xff]  ;;  %v541_v60 = vld [vmem:[#allocation2 + $0x3d8] sm:$0xff] }
  0xfa   :  { %846 = vmatprep.subr.mxu0 %v465_v62  ;;  %917 = vmatprep.subr.mxu1 %v593_v63  ;;  %v672_v59 = vld [vmem:[#allocation2 + $0x7f0] sm:$0xff]  ;;  %v669_v61 = vld [vmem:[#allocation2 + $0x7d8] sm:$0xff] }
  0xfb   :  { %847 = vmatpush1.msra.mxu0 %v464_v0  ;;  %918 = vmatpush1.msra.mxu1 %v592_v1  ;;  %v540_v62 = vld [vmem:[#allocation2 + $0x3d0] sm:$0xff]  ;;  %v537_v0 = vld [vmem:[#allocation2 + $0x3b8] sm:$0xff] }
  0xfc   :  { %848 = vmatprep.subr.mxu0 %v461_v2  ;;  %919 = vmatprep.subr.mxu1 %v589_v3  ;;  %v668_v63 = vld [vmem:[#allocation2 + $0x7d0] sm:$0xff]  ;;  %v665_v1 = vld [vmem:[#allocation2 + $0x7b8] sm:$0xff] }
  0xfd   :  { %849 = vmatpush1.msra.mxu0 %v460_v4  ;;  %920 = vmatpush1.msra.mxu1 %v588_v5  ;;  %v536_v2 = vld [vmem:[#allocation2 + $0x3b0] sm:$0xff]  ;;  %v533_v4 = vld [vmem:[#allocation2 + $0x398] sm:$0xff] }
  0xfe   :  { %850 = vmatprep.subr.mxu0 %v457_v6  ;;  %921 = vmatprep.subr.mxu1 %v585_v7  ;;  %v664_v3 = vld [vmem:[#allocation2 + $0x7b0] sm:$0xff]  ;;  %v661_v5 = vld [vmem:[#allocation2 + $0x798] sm:$0xff] }
  0xff   :  { %851 = vmatpush1.msra.mxu0 %v456_v8  ;;  %922 = vmatpush1.msra.mxu1 %v584_v9  ;;  %v532_v6 = vld [vmem:[#allocation2 + $0x390] sm:$0xff]  ;;  %v529_v8 = vld [vmem:[#allocation2 + $0x378] sm:$0xff] }
 0x100   :  { %852 = vmatprep.subr.mxu0 %v453_v10  ;;  %923 = vmatprep.subr.mxu1 %v581_v11  ;;  %v660_v7 = vld [vmem:[#allocation2 + $0x790] sm:$0xff]  ;;  %v657_v9 = vld [vmem:[#allocation2 + $0x778] sm:$0xff] }
 0x101   :  { %853 = vmatpush1.msra.mxu0 %v452_v12  ;;  %924 = vmatpush1.msra.mxu1 %v580_v13  ;;  %v528_v10 = vld [vmem:[#allocation2 + $0x370] sm:$0xff]  ;;  %v525_v12 = vld [vmem:[#allocation2 + $0x358] sm:$0xff] }
 0x102   :  { %854 = vmatprep.subr.mxu0 %v449_v14  ;;  %925 = vmatprep.subr.mxu1 %v577_v15  ;;  %v656_v11 = vld [vmem:[#allocation2 + $0x770] sm:$0xff]  ;;  %v653_v13 = vld [vmem:[#allocation2 + $0x758] sm:$0xff] }
 0x103   :  { %855 = vmatpush1.msra.mxu0 %v448_v16  ;;  %926 = vmatpush1.msra.mxu1 %v576_v19  ;;  %v524_v14 = vld [vmem:[#allocation2 + $0x350] sm:$0xff]  ;;  %v521_v16 = vld [vmem:[#allocation2 + $0x338] sm:$0xff] }
 0x104   :  { %856 = vmatprep.subr.mxu0 %v445_v20  ;;  %927 = vmatprep.subr.mxu1 %v573_v21  ;;  %v652_v15 = vld [vmem:[#allocation2 + $0x750] sm:$0xff]  ;;  %v649_v19 = vld [vmem:[#allocation2 + $0x738] sm:$0xff] }
 0x105   :  { %857 = vmatpush1.msra.mxu0 %v444_v22  ;;  %928 = vmatpush1.msra.mxu1 %v572_v25  ;;  %v520_v20 = vld [vmem:[#allocation2 + $0x330] sm:$0xff]  ;;  %v517_v22 = vld [vmem:[#allocation2 + $0x318] sm:$0xff] }
 0x106   :  { %858 = vmatprep.subr.mxu0 %v441_v28  ;;  %929 = vmatprep.subr.mxu1 %v569_v29  ;;  %v648_v21 = vld [vmem:[#allocation2 + $0x730] sm:$0xff]  ;;  %v645_v25 = vld [vmem:[#allocation2 + $0x718] sm:$0xff] }
 0x107   :  { %859 = vmatpush1.msra.mxu0 %v440_v30  ;;  %930 = vmatpush1.msra.mxu1 %v568_v31  ;;  %v516_v28 = vld [vmem:[#allocation2 + $0x310] sm:$0xff]  ;;  %v513_v30 = vld [vmem:[#allocation2 + $0x2f8] sm:$0xff] }
 0x108   :  { %860 = vmatprep.subr.mxu0 %v437_v32  ;;  %931 = vmatprep.subr.mxu1 %v565_v33  ;;  %v644_v29 = vld [vmem:[#allocation2 + $0x710] sm:$0xff]  ;;  %v641_v31 = vld [vmem:[#allocation2 + $0x6f8] sm:$0xff] }
 0x109   :  { %861 = vmatpush1.msra.mxu0 %v436_v34  ;;  %932 = vmatpush1.msra.mxu1 %v564_v35  ;;  %v512_v32 = vld [vmem:[#allocation2 + $0x2f0] sm:$0xff]  ;;  %v509_v34 = vld [vmem:[#allocation2 + $0x2d8] sm:$0xff] }
 0x10a   :  { %862 = vmatprep.subr.mxu0 %v433_v36  ;;  %933 = vmatprep.subr.mxu1 %v561_v37  ;;  %v640_v33 = vld [vmem:[#allocation2 + $0x6f0] sm:$0xff]  ;;  %v637_v35 = vld [vmem:[#allocation2 + $0x6d8] sm:$0xff] }
 0x10b   :  { %863 = vmatpush1.msra.mxu0 %v432_v38  ;;  %934 = vmatpush1.msra.mxu1 %v560_v39  ;;  %v508_v36 = vld [vmem:[#allocation2 + $0x2d0] sm:$0xff]  ;;  %v505_v38 = vld [vmem:[#allocation2 + $0x2b8] sm:$0xff] }
 0x10c   :  { %864 = vmatprep.subr.mxu0 %v429_v42  ;;  %935 = vmatprep.subr.mxu1 %v557_v43  ;;  %v636_v37 = vld [vmem:[#allocation2 + $0x6d0] sm:$0xff]  ;;  %v633_v39 = vld [vmem:[#allocation2 + $0x6b8] sm:$0xff] }
 0x10d   :  { %865 = vmatpush1.msra.mxu0 %v428_v44  ;;  %936 = vmatpush1.msra.mxu1 %v556_v45  ;;  %v504_v42 = vld [vmem:[#allocation2 + $0x2b0] sm:$0xff]  ;;  %v501_v44 = vld [vmem:[#allocation2 + $0x298] sm:$0xff] }
 0x10e   :  { %866 = vmatprep.subr.mxu0 %v425_v48  ;;  %937 = vmatprep.subr.mxu1 %v553_v49  ;;  %v632_v43 = vld [vmem:[#allocation2 + $0x6b0] sm:$0xff]  ;;  %v629_v45 = vld [vmem:[#allocation2 + $0x698] sm:$0xff] }
 0x10f   :  { %867 = vmatpush1.msra.mxu0 %v424_v50  ;;  %938 = vmatpush1.msra.mxu1 %v552_v51  ;;  %v500_v48 = vld [vmem:[#allocation2 + $0x290] sm:$0xff]  ;;  %v497_v50 = vld [vmem:[#allocation2 + $0x278] sm:$0xff] }
 0x110   :  { %868 = vmatprep.subr.mxu0 %v421_v52  ;;  %939 = vmatprep.subr.mxu1 %v549_v53  ;;  %v628_v49 = vld [vmem:[#allocation2 + $0x690] sm:$0xff]  ;;  %v625_v51 = vld [vmem:[#allocation2 + $0x678] sm:$0xff] }
 0x111   :  { %869 = vmatpush1.msra.mxu0 %v420_v54  ;;  %940 = vmatpush1.msra.mxu1 %v548_v55  ;;  %v496_v52 = vld [vmem:[#allocation2 + $0x270] sm:$0xff]  ;;  %v493_v54 = vld [vmem:[#allocation2 + $0x258] sm:$0xff] }
 0x112   :  { %870 = vmatprep.subr.mxu0 %v545_v56  ;;  %941 = vmatprep.subr.mxu1 %v673_v57  ;;  %v624_v53 = vld [vmem:[#allocation2 + $0x670] sm:$0xff]  ;;  %v621_v55 = vld [vmem:[#allocation2 + $0x658] sm:$0xff] }
 0x113   :  { %871 = vmatpush2.msra.mxu0 %v544_v58  ;;  %942 = vmatpush2.msra.mxu1 %v672_v59  ;;  %v492_v56 = vld [vmem:[#allocation2 + $0x250] sm:$0xff]  ;;  %v489_v58 = vld [vmem:[#allocation2 + $0x238] sm:$0xff] }
 0x114   :  { %872 = vmatprep.subr.mxu0 %v541_v60  ;;  %943 = vmatprep.subr.mxu1 %v669_v61  ;;  %v620_v57 = vld [vmem:[#allocation2 + $0x650] sm:$0xff]  ;;  %v617_v59 = vld [vmem:[#allocation2 + $0x638] sm:$0xff] }
 0x115   :  { %873 = vmatpush2.msra.mxu0 %v540_v62  ;;  %944 = vmatpush2.msra.mxu1 %v668_v63  ;;  %v488_v60 = vld [vmem:[#allocation2 + $0x230] sm:$0xff]  ;;  %v485_v62 = vld [vmem:[#allocation2 + $0x218] sm:$0xff] }
 0x116   :  { %874 = vmatprep.subr.mxu0 %v537_v0  ;;  %945 = vmatprep.subr.mxu1 %v665_v1  ;;  %v616_v61 = vld [vmem:[#allocation2 + $0x630] sm:$0xff]  ;;  %v613_v63 = vld [vmem:[#allocation2 + $0x618] sm:$0xff] }
 0x117   :  { %875 = vmatpush2.msra.mxu0 %v536_v2  ;;  %946 = vmatpush2.msra.mxu1 %v664_v3  ;;  %v484_v0 = vld [vmem:[#allocation2 + $0x210] sm:$0xff]  ;;  %v1015_v2 = vld [vmem:[%s1681_s7 + $0xf8] sm:$0xff] }
 0x118   :  { %876 = vmatprep.subr.mxu0 %v533_v4  ;;  %947 = vmatprep.subr.mxu1 %v661_v5  ;;  %v612_v1 = vld [vmem:[#allocation2 + $0x610] sm:$0xff]  ;;  %v999_v3 = vld [vmem:[%s1681_s7 + $0x78] sm:$0xff] }
 0x119   :  { %877 = vmatpush2.msra.mxu0 %v532_v6  ;;  %948 = vmatpush2.msra.mxu1 %v660_v7  ;;  %v1014_v4 = vld [vmem:[%s1681_s7 + $0xf0] sm:$0xff]  ;;  %v1013_v6 = vld [vmem:[%s1681_s7 + $0xe8] sm:$0xff]  ;;  %v995_v7 = vld [vmem:[%s1681_s7 + $0x58] sm:$0xff] }
 0x11a   :  { %878 = vmatprep.subr.mxu0 %v529_v8  ;;  %949 = vmatprep.subr.mxu1 %v657_v9  ;;  %v998_v5 = vld [vmem:[%s1681_s7 + $0x70] sm:$0xff] }
 0x11b   :  { %879 = vmatpush2.msra.mxu0 %v528_v10  ;;  %950 = vmatpush2.msra.mxu1 %v656_v11  ;;  %v1010_v8 = vld [vmem:[%s1681_s7 + $0xd0] sm:$0xff]  ;;  %v1047_v10 = vld [vmem:[%s1681_s7 + $0x1f8] sm:$0xff] }
 0x11c   :  { %880 = vmatprep.subr.mxu0 %v525_v12  ;;  %951 = vmatprep.subr.mxu1 %v653_v13  ;;  %v994_v9 = vld [vmem:[%s1681_s7 + $0x50] sm:$0xff]  ;;  %v1031_v11 = vld [vmem:[%s1681_s7 + $0x178] sm:$0xff]  ;;  %v1009_v13 = vld [vmem:[%s1681_s7 + $0xc8] sm:$0xff] }
 0x11d   :  { %881 = vmatpush2.msra.mxu0 %v524_v14  ;;  %952 = vmatpush2.msra.mxu1 %v652_v15  ;;  %v1046_v12 = vld [vmem:[%s1681_s7 + $0x1f0] sm:$0xff]  ;;  %v993_v15 = vld [vmem:[%s1681_s7 + $0x48] sm:$0xff] }
 0x11e   :  { %882 = vmatprep.subr.mxu0 %v521_v16  ;;  %953 = vmatprep.subr.mxu1 %v649_v19  ;;  %v1030_v14 = vld [vmem:[%s1681_s7 + $0x170] sm:$0xff]  ;;  %v1045_v16 = vld [vmem:[%s1681_s7 + $0x1e8] sm:$0xff]  ;;  %v1008_v19 = vld [vmem:[%s1681_s7 + $0xc0] sm:$0xff] }
 0x11f   :  { %883 = vmatpush2.msra.mxu0 %v520_v20  ;;  %954 = vmatpush2.msra.mxu1 %v648_v21  ;;  %v1029_v20 = vld [vmem:[%s1681_s7 + $0x168] sm:$0xff]  ;;  %v992_v21 = vld [vmem:[%s1681_s7 + $0x40] sm:$0xff] }
 0x120   :  { %884 = vmatprep.subr.mxu0 %v517_v22  ;;  %955 = vmatprep.subr.mxu1 %v645_v25  ;;  %v1044_v22 = vld [vmem:[%s1681_s7 + $0x1e0] sm:$0xff]  ;;  %v1007_v25 = vld [vmem:[%s1681_s7 + $0xb8] sm:$0xff] }
 0x121   :  { %885 = vmatpush2.msra.mxu0 %v516_v28  ;;  %956 = vmatpush2.msra.mxu1 %v644_v29  ;;  %v1028_v28 = vld [vmem:[%s1681_s7 + $0x160] sm:$0xff]  ;;  %v991_v29 = vld [vmem:[%s1681_s7 + $0x38] sm:$0xff] }
 0x122   :  { %886 = vmatprep.subr.mxu0 %v513_v30  ;;  %957 = vmatprep.subr.mxu1 %v641_v31  ;;  %v1043_v30 = vld [vmem:[%s1681_s7 + $0x1d8] sm:$0xff]  ;;  %v1006_v31 = vld [vmem:[%s1681_s7 + $0xb0] sm:$0xff] }
 0x123   :  { %887 = vmatpush2.msra.mxu0 %v512_v32  ;;  %958 = vmatpush2.msra.mxu1 %v640_v33  ;;  %v1027_v32 = vld [vmem:[%s1681_s7 + $0x158] sm:$0xff]  ;;  %v990_v33 = vld [vmem:[%s1681_s7 + $0x30] sm:$0xff] }
 0x124   :  { %888 = vmatprep.subr.mxu0 %v509_v34  ;;  %959 = vmatprep.subr.mxu1 %v637_v35  ;;  %v1042_v34 = vld [vmem:[%s1681_s7 + $0x1d0] sm:$0xff]  ;;  %v1005_v35 = vld [vmem:[%s1681_s7 + $0xa8] sm:$0xff] }
 0x125   :  { %889 = vmatpush2.msra.mxu0 %v508_v36  ;;  %960 = vmatpush2.msra.mxu1 %v636_v37  ;;  %v1026_v36 = vld [vmem:[%s1681_s7 + $0x150] sm:$0xff]  ;;  %v989_v37 = vld [vmem:[%s1681_s7 + $0x28] sm:$0xff] }
 0x126   :  { %890 = vmatprep.subr.mxu0 %v505_v38  ;;  %961 = vmatprep.subr.mxu1 %v633_v39  ;;  %v1041_v38 = vld [vmem:[%s1681_s7 + $0x1c8] sm:$0xff]  ;;  %v1004_v39 = vld [vmem:[%s1681_s7 + $0xa0] sm:$0xff] }
 0x127   :  { %891 = vmatpush2.msra.mxu0 %v504_v42  ;;  %962 = vmatpush2.msra.mxu1 %v632_v43  ;;  %v1025_v42 = vld [vmem:[%s1681_s7 + $0x148] sm:$0xff]  ;;  %v988_v43 = vld [vmem:[%s1681_s7 + $0x20] sm:$0xff] }
 0x128   :  { %892 = vmatprep.subr.mxu0 %v501_v44  ;;  %963 = vmatprep.subr.mxu1 %v629_v45  ;;  %v1040_v44 = vld [vmem:[%s1681_s7 + $0x1c0] sm:$0xff]  ;;  %v1003_v45 = vld [vmem:[%s1681_s7 + $0x98] sm:$0xff] }
 0x129   :  { %893 = vmatpush2.msra.mxu0 %v500_v48  ;;  %964 = vmatpush2.msra.mxu1 %v628_v49  ;;  %v1024_v48 = vld [vmem:[%s1681_s7 + $0x140] sm:$0xff]  ;;  %v987_v49 = vld [vmem:[%s1681_s7 + $0x18] sm:$0xff] }
 0x12a   :  { %894 = vmatprep.subr.mxu0 %v497_v50  ;;  %965 = vmatprep.subr.mxu1 %v625_v51  ;;  %v1039_v50 = vld [vmem:[%s1681_s7 + $0x1b8] sm:$0xff]  ;;  %v1002_v51 = vld [vmem:[%s1681_s7 + $0x90] sm:$0xff] }
 0x12b   :  { %895 = vmatpush2.msra.mxu0 %v496_v52  ;;  %966 = vmatpush2.msra.mxu1 %v624_v53  ;;  %v1023_v52 = vld [vmem:[%s1681_s7 + $0x138] sm:$0xff]  ;;  %v986_v53 = vld [vmem:[%s1681_s7 + $0x10] sm:$0xff] }
 0x12c   :  { %896 = vmatprep.subr.mxu0 %v493_v54  ;;  %967 = vmatprep.subr.mxu1 %v621_v55  ;;  %v1038_v54 = vld [vmem:[%s1681_s7 + $0x1b0] sm:$0xff]  ;;  %v1001_v55 = vld [vmem:[%s1681_s7 + $0x88] sm:$0xff] }
 0x12d   :  { %897 = vmatpush2.msra.mxu0 %v492_v56  ;;  %968 = vmatpush2.msra.mxu1 %v620_v57  ;;  %v1022_v56 = vld [vmem:[%s1681_s7 + $0x130] sm:$0xff]  ;;  %v985_v57 = vld [vmem:[%s1681_s7 + $0x8] sm:$0xff] }
 0x12e   :  { %898 = vmatprep.subr.mxu0 %v489_v58  ;;  %969 = vmatprep.subr.mxu1 %v617_v59  ;;  %v1037_v58 = vld [vmem:[%s1681_s7 + $0x1a8] sm:$0xff]  ;;  %v1000_v59 = vld [vmem:[%s1681_s7 + $0x80] sm:$0xff] }
 0x12f   :  { %899 = vmatpush2.msra.mxu0 %v488_v60  ;;  %970 = vmatpush2.msra.mxu1 %v616_v61  ;;  %v1021_v60 = vld [vmem:[%s1681_s7 + $0x128] sm:$0xff]  ;;  %v984_v61 = vld [vmem:[%s1681_s7] sm:$0xff] }
 0x130   :  { %900 = vmatprep.subr.mxu0 %v485_v62  ;;  %971 = vmatprep.subr.mxu1 %v613_v63  ;;  %v1036_v62 = vld [vmem:[%s1681_s7 + $0x1a0] sm:$0xff] }
 0x131   :  { %901 = vmatpush2.msra.mxu0 %v484_v0  ;;  %972 = vmatpush2.msra.mxu1 %v612_v1  ;;  %v1020_v63 = vld [vmem:[%s1681_s7 + $0x120] sm:$0xff]  ;;  %v1035_v0 = vld [vmem:[%s1681_s7 + $0x198] sm:$0xff] }
 0x132   :  { %903 = vmatmul.mubr.f32.vlgmr.msra.gmra.mxu0 %v414_v46  ;;  %974 = vmatmul.mubr.f32.vlgmr.msra.gmra.mxu1 %v416_v47  ;;  %v996_v46 = vld [vmem:[%s1681_s7 + $0x60] sm:$0xff]  ;;  %v1011_v47 = vld [vmem:[%s1681_s7 + $0xd8] sm:$0xff] }
 0x133   :  { %1217 = vmatprep.subr.mxu0 %v1015_v2  ;;  %1252 = vmatprep.subr.mxu1 %v1047_v10  ;;  %v1019_v1 = vld [vmem:[%s1681_s7 + $0x118] sm:$0xff]  ;;  %v1034_v2 = vld [vmem:[%s1681_s7 + $0x190] sm:$0xff] }
 0x134   :  { %1218 = vmatpush3.msra.mxu0 %v999_v3  ;;  %1253 = vmatpush3.msra.mxu1 %v1031_v11  ;;  %v1018_v3 = vld [vmem:[%s1681_s7 + $0x110] sm:$0xff] }
 0x135   :  { %1219 = vmatprep.subr.mxu0 %v1014_v4  ;;  %1254 = vmatprep.subr.mxu1 %v1046_v12  ;;  %v1033_v4 = vld [vmem:[%s1681_s7 + $0x188] sm:$0xff] }
 0x136   :  { %1220 = vmatpush3.msra.mxu0 %v998_v5  ;;  %1255 = vmatpush3.msra.mxu1 %v1030_v14  ;;  %v1017_v5 = vld [vmem:[%s1681_s7 + $0x108] sm:$0xff] }
 0x137   :  { %1221 = vmatprep.subr.mxu0 %v1013_v6  ;;  %1256 = vmatprep.subr.mxu1 %v1045_v16  ;;  %v1032_v6 = vld [vmem:[%s1681_s7 + $0x180] sm:$0xff] }
 0x138   :  { %1222 = vmatpush3.msra.mxu0 %v997_v40  ;;  %1257 = vmatpush3.msra.mxu1 %v1029_v20  ;;  %v1016_v40 = vld [vmem:[%s1681_s7 + $0x100] sm:$0xff]  ;;  %s1216_s7 = sld [smem:[#allocation5 + $0x1]] }
 0x139   :  { %1223 = vmatprep.subr.mxu0 %v1012_v41  ;;  %1258 = vmatprep.subr.mxu1 %v1044_v22  ;;  %v674_v41 = vld [vmem:[%s1680_s6] sm:$0xf]  ;;  %s1051_s6 = sld [smem:[#allocation5]] }
 0x13a   :  { %1224 = vmatpush3.msra.mxu0 %v996_v46  ;;  %1259 = vmatpush3.msra.mxu1 %v1028_v28  ;;  %v679_v46 = vrot.slane %v674_v41, %v392_v23  ;;  %v691_v23 = vrot.slane %v674_v41, %v404_v27 }
 0x13b   :  { %1225 = vmatprep.subr.mxu0 %v1011_v47  ;;  %1260 = vmatprep.subr.mxu1 %v1043_v30  ;;  %v683_v47 = vrot.slane %v674_v41, %v396_v26 }
 0x13c   :  { %1226 = vmatpush3.msra.mxu0 %v995_v7  ;;  %1261 = vmatpush3.msra.mxu1 %v1027_v32 }
 0x13d   :  { %1227 = vmatprep.subr.mxu0 %v1010_v8  ;;  %1262 = vmatprep.subr.mxu1 %v1042_v34 }
 0x13e   :  { %1228 = vmatpush3.msra.mxu0 %v994_v9  ;;  %1263 = vmatpush3.msra.mxu1 %v1026_v36  ;;  %v1054_v27 = vstv %s1216_s7 }
 0x13f   :  { %1229 = vmatprep.subr.mxu0 %v1009_v13  ;;  %1264 = vmatprep.subr.mxu1 %v1041_v38  ;;  %v1053_v18 = vstv %s1051_s6 }
 0x140   :  { %1230 = vmatpush3.msra.mxu0 %v993_v15  ;;  %1265 = vmatpush3.msra.mxu1 %v1025_v42 }
 0x141   :  { %1231 = vmatprep.subr.mxu0 %v1008_v19  ;;  %1266 = vmatprep.subr.mxu1 %v1040_v44  ;;  %v687_v19 = vrot.slane %v674_v41, %v400_v24  ;;  %v1049_v24 = vand.u32 127, %v390_v17 }
 0x142   :  { %1232 = vmatpush3.msra.mxu0 %v992_v21  ;;  %1267 = vmatpush3.msra.mxu1 %v1024_v48 }
 0x143   :  { %1233 = vmatprep.subr.mxu0 %v1007_v25  ;;  %1268 = vmatprep.subr.mxu1 %v1039_v50  ;;  %vm1050_vm3 = vcmp.eq.s32.totalorder %v1049_v24, 0 }
 0x144   :  { %1234 = vmatpush3.msra.mxu0 %v991_v29  ;;  %1269 = vmatpush3.msra.mxu1 %v1023_v52  ;;  %v1055_v36 = vsel %vm1050_vm3, %v1053_v18, %v1054_v27 }
 0x145   :  { %1235 = vmatprep.subr.mxu0 %v1006_v31  ;;  %1270 = vmatprep.subr.mxu1 %v1038_v54 }
 0x146   :  { %1236 = vmatpush3.msra.mxu0 %v990_v33  ;;  %1271 = vmatpush3.msra.mxu1 %v1022_v56 }
 0x147   :  { %1237 = vmatprep.subr.mxu0 %v1005_v35  ;;  %1272 = vmatprep.subr.mxu1 %v1037_v58 }
 0x148   :  { %1238 = vmatpush3.msra.mxu0 %v989_v37  ;;  %1273 = vmatpush3.msra.mxu1 %v1021_v60 }
 0x149   :  { %1239 = vmatprep.subr.mxu0 %v1004_v39  ;;  %1274 = vmatprep.subr.mxu1 %v1036_v62 }
 0x14a   :  { %1240 = vmatpush3.msra.mxu0 %v988_v43  ;;  %1275 = vmatpush3.msra.mxu1 %v1020_v63 }
 0x14b   :  { %1241 = vmatprep.subr.mxu0 %v1003_v45  ;;  %1276 = vmatprep.subr.mxu1 %v1035_v0 }
 0x14c   :  { %1242 = vmatpush3.msra.mxu0 %v987_v49  ;;  %1277 = vmatpush3.msra.mxu1 %v1019_v1 }
 0x14d   :  { %1243 = vmatprep.subr.mxu0 %v1002_v51  ;;  %1278 = vmatprep.subr.mxu1 %v1034_v2 }
 0x14e   :  { %1244 = vmatpush3.msra.mxu0 %v986_v53  ;;  %1279 = vmatpush3.msra.mxu1 %v1018_v3 }
 0x14f   :  { %1245 = vmatprep.subr.mxu0 %v1001_v55  ;;  %1280 = vmatprep.subr.mxu1 %v1033_v4 }
 0x150   :  { %1246 = vmatpush3.msra.mxu0 %v985_v57  ;;  %1281 = vmatpush3.msra.mxu1 %v1017_v5 }
 0x151   :  { %1247 = vmatprep.subr.mxu0 %v1000_v59  ;;  %1282 = vmatprep.subr.mxu1 %v1032_v6 }
 0x152   :  { %1248 = vmatpush3.msra.mxu0 %v984_v61  ;;  %1283 = vmatpush3.msra.mxu1 %v1016_v40 }
 0x1b1   :  { %v762_v7 = vpop.f32.mrf.mxu0  ;;  %v833_v8 = vpop.f32.mrf.mxu1 }
 0x1b2   :  { %v763_v9 = vadd.f32 %v762_v7, %v679_v46 }
 0x1b3   :  { %v764_v10 = vpop.f32.mrf.mxu0  ;;  %v835_v13 = vpop.f32.mrf.mxu1 }
 0x1b4   :  { %v765_v11 = vadd.f32 %v764_v10, %v683_v47  ;;  %v834_v12 = vadd.f32 %v833_v8, %v763_v9 }
 0x1b6   :  { %v836_v14 = vadd.f32 %v835_v13, %v765_v11  ;;  %v980_v16 = vmax.f32 %v834_v12, 0.0 }
 0x1b8   :  { %v981_v15 = vmax.f32 %v836_v14, 0.0 }
 0x1ba   :  { %1120 = vmatprep.mubr.f32.mxu0 %v981_v15 }
 0x1bb   :  { %1121 = vmatmul.mubr.f32.vlgmr.msra.gmra.mxu0 %v980_v16 }
 0x1f2   :  { %v904_v20 = vpop.f32.mrf.mxu0  ;;  %v975_v26 = vpop.f32.mrf.mxu1 }
 0x1f3   :  { %v905_v21 = vadd.f32 %v904_v20, %v687_v19 }
 0x1f4   :  { %v906_v22 = vpop.f32.mrf.mxu0  ;;  %v977_v29 = vpop.f32.mrf.mxu1 }
 0x1f5   :  { %v907_v25 = vadd.f32 %v906_v22, %v691_v23  ;;  %v976_v28 = vadd.f32 %v975_v26, %v905_v21 }
 0x1f7   :  { %v978_v30 = vadd.f32 %v977_v29, %v907_v25  ;;  %v982_v32 = vmax.f32 %v976_v28, 0.0 }
 0x1f9   :  { %v983_v31 = vmax.f32 %v978_v30, 0.0 }
 0x1fb   :  { %1190 = vmatprep.mubr.f32.mxu1 %v983_v31 }
 0x1fc   :  { %1191 = vmatmul.mubr.f32.vlgmr.msra.gmra.mxu1 %v982_v32 }
 0x27b   :  { %v1249_v33 = vpop.f32.mrf.mxu0 }
 0x27d   :  { %v1250_v34 = vpop.f32.mrf.mxu0 }
 0x27e   :  { %v1251_v35 = vadd.f32 %v1250_v34, %v1249_v33 }
 0x280   :  { %v1123_v39 = vadd.f32 %v1251_v35, %v1055_v36 }
 0x2bc   :  { %v1284_v37 = vpop.f32.mrf.mxu1 }
 0x2be   :  { %v1285_v38 = vpop.f32.mrf.mxu1 }
 0x2bf   :  { %v1286_v42 = vadd.f32 %v1285_v38, %v1284_v37 }
 0x2c1   :  { %v1193_v43 = vadd.f32 %v1286_v42, %v1123_v39 }
 0x2c3   :  { %1197 = vst.msk [vmem:[%s1683_s9] sm:$0xff] %vm1196_vm4, %v1193_v43 }
 0x2c4   :  { %1202 = vsyncpa [#allocation3], 1 }
 0x2c5   :  { %1203 = vsyncpa [#allocation4], 1 }

</bundles_post_ra>
